<compile_context>
chip_gen: v5e
topology: v5e:2x2
jax: 0.10.0
libtpu: 0.0.40
codegen_flags: <defaults>
</compile_context>

<pallas_src>
import functools
import math

import jax
import jax.numpy as jnp
from jax import lax
from jax.experimental import pallas as pl
from jax.experimental.pallas import tpu as pltpu


def _make_pe(d_model: int, max_len: int = 5000, dtype=jnp.float32) -> jnp.ndarray:
    """Sinusoidal positional-encoding table, shape (max_len, 1, d_model)."""
    position = jnp.arange(0, max_len, dtype=jnp.float32)[:, None]            # (max_len, 1)
    div_term = jnp.exp(
        jnp.arange(0, d_model, 2, dtype=jnp.float32) * (-math.log(10000.0) / d_model)
    )                                                                         # (d_model//2,)
    angles = position * div_term                                              # (max_len, d_model//2)
    pe = jnp.zeros((max_len, d_model), dtype=jnp.float32)
    pe = pe.at[:, 0::2].set(jnp.sin(angles))
    pe = pe.at[:, 1::2].set(jnp.cos(angles))
    # unsqueeze(0).transpose(0, 1)  ->  (max_len, 1, d_model)
    return pe[:, None, :].astype(dtype)


def _round_up(a: int, b: int) -> int:
    return -(-a // b) * b


def _pos_enc_kernel_2d(x_ref, pe_ref, o_ref, *, batch: int, d_model: int):
    """x_ref / o_ref: (tS, batch * d_model); pe_ref: (tS, d_model)."""
    pe = pe_ref[...]
    if batch == 1:
        o_ref[...] = (x_ref[...] + pe).astype(o_ref.dtype)
    elif batch <= 8:
        # Small batch: static lane-range slices (D % 128 == 0 on this path,
        # so each slice is an unmasked full-vreg op).
        for b in range(batch):
            sl = slice(b * d_model, (b + 1) * d_model)
            o_ref[:, sl] = (x_ref[:, sl] + pe).astype(o_ref.dtype)
    else:
        # Large batch: compact loop instead of a huge trace-time unroll.
        def body(b, carry):
            off = pl.multiple_of(b * d_model, 128)
            o_ref[:, pl.ds(off, d_model)] = (
                x_ref[:, pl.ds(off, d_model)] + pe
            ).astype(o_ref.dtype)
            return carry

        lax.fori_loop(0, batch, body, 0, unroll=False)


def _pos_enc_kernel_3d(x_ref, pe_ref, o_ref):
    """x_ref / o_ref: (tS, B, D); pe_ref: (tS, 1, D) broadcast over B (sublanes)."""
    o_ref[...] = (x_ref[...] + pe_ref[...]).astype(o_ref.dtype)


def _choose_tile_s(seq_len: int, row_bytes: int, itemsize: int,
                   target_bytes: int = 4 << 20) -> int:
    """Pick a sequence tile: ~target_bytes of x per block, dtype-aware rounding,
    and (when S allows) at least two grid steps for v7x megacore sharding."""
    sub = 8 * max(1, 4 // max(int(itemsize), 1))   # 8 (f32) / 16 (bf16) / 32 (int8)
    t = (target_bytes // max(row_bytes, 1)) // sub * sub
    t = max(sub, t)
    # Keep >= 2 grid steps where possible so both v7x TensorCores get work.
    half = _round_up(-(-seq_len // 2), sub)
    t = min(t, half)
    if t >= seq_len:
        return seq_len
    return t


def positional_encoding_forward(x: jnp.ndarray, pe: jnp.ndarray) -> jnp.ndarray:
    """x: (S, B, D); pe: (max_len, 1, D). Returns x + pe[:S] (broadcast over B)."""
    S, B, D = x.shape
    max_len = pe.shape[0]
    assert pe.shape[1] == 1 and pe.shape[2] == D, "pe must be (max_len, 1, d_model)"
    assert S <= max_len, "sequence length exceeds max_len"

    itemsize = x.dtype.itemsize
    use_2d = (B == 1) or (D % 128 == 0)

    # Effective (layout-padded) bytes per sequence row, used for tile sizing
    # and the VMEM-limit computation.
    if use_2d:
        x_row_elems = B * D
        pe_row_elems = _round_up(D, 128)
    else:
        x_row_elems = _round_up(B, 8) * _round_up(D, 128)
        pe_row_elems = 8 * _round_up(D, 128)
    row_bytes = x_row_elems * itemsize

    tS = _choose_tile_s(S, row_bytes, itemsize)
    grid = (pl.cdiv(S, tS),)

    # Double-buffered x, out, and pe tiles + headroom.
    x_tile_bytes = tS * x_row_elems * itemsize
    pe_tile_bytes = tS * pe_row_elems * itemsize
    needed = 2 * (2 * x_tile_bytes + pe_tile_bytes)
    vmem_limit = min(max(int(needed * 1.25) + (2 << 20), 32 << 20), 64 << 20)

    cost = pl.CostEstimate(
        flops=S * B * D,
        transcendentals=0,
        bytes_accessed=2 * S * B * D * itemsize + S * D * itemsize,
    )
    compiler_params = pltpu.CompilerParams(
        dimension_semantics=("parallel",),
        vmem_limit_bytes=vmem_limit,
    )

    if use_2d:
        # Lane-dense 2-D view (free row-major reshape).
        x2 = x.reshape(S, B * D)
        pe2 = pe.reshape(max_len, D).astype(x.dtype)
        kernel = functools.partial(_pos_enc_kernel_2d, batch=B, d_model=D)
        out2 = pl.pallas_call(
            kernel,
            out_shape=jax.ShapeDtypeStruct((S, B * D), x.dtype),
            grid_spec=pltpu.PrefetchScalarGridSpec(
                num_scalar_prefetch=0,
                grid=grid,
                in_specs=[
                    pl.BlockSpec((tS, B * D), lambda s: (s, 0)),   # x tile
                    pl.BlockSpec((tS, D), lambda s: (s, 0)),       # pe rows
                ],
                out_specs=pl.BlockSpec((tS, B * D), lambda s: (s, 0)),
            ),
            compiler_params=compiler_params,
            cost_estimate=cost,
        )(x2, pe2)
        return out2.reshape(S, B, D)

    # 3-D path: broadcast pe over the batch (sublane) axis in a single add.
    pe3 = pe.astype(x.dtype)                        # (max_len, 1, D)
    out = pl.pallas_call(
        _pos_enc_kernel_3d,
        out_shape=jax.ShapeDtypeStruct((S, B, D), x.dtype),
        grid_spec=pltpu.PrefetchScalarGridSpec(
            num_scalar_prefetch=0,
            grid=grid,
            in_specs=[
                pl.BlockSpec((tS, B, D), lambda s: (s, 0, 0)),     # x tile
                pl.BlockSpec((tS, 1, D), lambda s: (s, 0, 0)),     # pe rows
            ],
            out_specs=pl.BlockSpec((tS, B, D), lambda s: (s, 0, 0)),
        ),
        compiler_params=compiler_params,
        cost_estimate=cost,
    )(x, pe3)
    return out


if __name__ == "__main__":
    d_model = 32
    max_len = 64          # small synthetic table (module default is 5000)
    seq, batch = 8, 2

    key = jax.random.PRNGKey(0)
    x = jax.random.normal(key, (seq, batch, d_model), dtype=jnp.float32)

    pe = _make_pe(d_model, max_len=max_len)

    # Plain-JAX reference.
    ref = x + pe[:seq, :]
    ref = jax.block_until_ready(ref)

    out = positional_encoding_forward(x, pe)
    out = jax.block_until_ready(out)

    assert out.shape == (seq, batch, d_model)
    assert jnp.allclose(out, ref, atol=1e-6), "mismatch vs reference"

    print("KERNEL_OK")
</pallas_src>

<mosaic_0001>
module attributes {stable_mosaic.version = 11 : i64} {
  func.func @_pos_enc_kernel_3d(%arg0: i32, %arg1: memref<8x2x32xf32, #tpu.memory_space<vmem>>, %arg2: memref<8x1x32xf32, #tpu.memory_space<vmem>>, %arg3: memref<8x2x32xf32, #tpu.memory_space<vmem>>) attributes {dimension_semantics = [#tpu.dimension_semantics<parallel>], iteration_bounds = array<i64: 1>, scalar_prefetch = 0 : i64, scratch_operands = 0 : i64, tpu.core_type = #tpu.core_type<tc>, window_params = [{transform_indices = @transform_0, window_bounds = array<i64: 8, 2, 32>}, {transform_indices = @transform_1, window_bounds = array<i64: 8, 1, 32>}, {transform_indices = @transform_2, window_bounds = array<i64: 8, 2, 32>}]} {
    %c0 = arith.constant 0 : index
    %c0_0 = arith.constant 0 : index
    %c0_1 = arith.constant 0 : index
    %0 = vector.load %arg1[%c0, %c0_0, %c0_1] : memref<8x2x32xf32, #tpu.memory_space<vmem>>, vector<8x2x32xf32>
    %c0_2 = arith.constant 0 : index
    %c0_3 = arith.constant 0 : index
    %c0_4 = arith.constant 0 : index
    %1 = vector.load %arg2[%c0_2, %c0_3, %c0_4] : memref<8x1x32xf32, #tpu.memory_space<vmem>>, vector<8x1x32xf32>
    %2 = vector.broadcast %1 : vector<8x1x32xf32> to vector<8x2x32xf32>
    %3 = arith.addf %0, %2 : vector<8x2x32xf32>
    %c0_5 = arith.constant 0 : index
    %c0_6 = arith.constant 0 : index
    %c0_7 = arith.constant 0 : index
    %4 = vector.load %arg3[%c0_5, %c0_6, %c0_7] : memref<8x2x32xf32, #tpu.memory_space<vmem>>, vector<8x2x32xf32>
    tpu.vector_store %arg3[%c0_5, %c0_6, %c0_7], %3 {strides = array<i32>} : memref<8x2x32xf32, #tpu.memory_space<vmem>>, vector<8x2x32xf32>,
    return
  }
  func.func @transform_0(%arg0: i32) -> (i32, i32, i32) {
    %c0_i32 = arith.constant 0 : i32
    %c0_i32_0 = arith.constant 0 : i32
    %c0_i32_1 = arith.constant 0 : i32
    return %arg0, %c0_i32, %c0_i32_0 : i32, i32, i32
  }
  func.func @transform_1(%arg0: i32) -> (i32, i32, i32) {
    %c0_i32 = arith.constant 0 : i32
    %c0_i32_0 = arith.constant 0 : i32
    %c0_i32_1 = arith.constant 0 : i32
    return %arg0, %c0_i32, %c0_i32_0 : i32, i32, i32
  }
  func.func @transform_2(%arg0: i32) -> (i32, i32, i32) {
    %c0_i32 = arith.constant 0 : i32
    %c0_i32_0 = arith.constant 0 : i32
    %c0_i32_1 = arith.constant 0 : i32
    return %arg0, %c0_i32, %c0_i32_0 : i32, i32, i32
  }
}

</mosaic_0001>

<bundles_post_ra>
// kernel: tpu_custom_call.1
= control target key start
LH: loop header
LB: loop body
LE: loop exit
PB: predicated region body
PF: predicated region fallthrough
CT: control target
= control target key end

     0   :  { %vm60_vm0 = vcmask 254976   ;;  %s201_s0 = inlined_call_operand.vmem [shape: f32[8,2,32], index: 0, kind: input, shape index: {}]   ;;  %s202_s1 = inlined_call_operand.vmem [shape: f32[64,1,32], index: 1, kind: input, shape index: {}]   ;;  %s203_s2 = inlined_call_operand.hbm [shape: f32[8,2,32], index: 2, kind: output, shape index: {}]  }
   0x1   :  { %v12_v0 = vld [vmem:[%s201_s0] sm:$0x3]  ;;  %v13_v2 = vld [vmem:[%s201_s0 + $0x2] sm:$0x3]  ;;  %v14_v5 = vld [vmem:[%s201_s0 + $0x4] sm:$0x3] }
   0x2   :  { %v90_v1 = vld [vmem:[%s202_s1] ss:$0 sm:$0xff]  ;;  %v91_v4 = vld [vmem:[%s202_s1 + $0x1] ss:$0 sm:$0xff]  ;;  %v92_v6 = vld [vmem:[%s202_s1 + $0x2] ss:$0 sm:$0xff] }
   0x3   :  { %v52_v3 = vadd.f32 %v90_v1, %v12_v0  ;;  %v15_v7 = vld [vmem:[%s201_s0 + $0x6] sm:$0x3]  ;;  %v53_v8 = vadd.f32 %v91_v4, %v13_v2  ;;  %v93_v9 = vld [vmem:[%s202_s1 + $0x3] ss:$0 sm:$0xff]  ;;  %v16_v10 = vld [vmem:[%s201_s0 + $0x8] sm:$0x3]  ;;  %v54_v11 = vadd.f32 %v92_v6, %v14_v5 }
   0x4   :  { %v94_v12 = vld [vmem:[%s202_s1 + $0x4] ss:$0 sm:$0xff]  ;;  %v17_v13 = vld [vmem:[%s201_s0 + $0xa] sm:$0x3]  ;;  %v55_v14 = vadd.f32 %v93_v9, %v15_v7  ;;  %v95_v15 = vld [vmem:[%s202_s1 + $0x5] ss:$0 sm:$0xff] }
   0x5   :  { %61 = vst.msk [vmem:[#allocation2] sm:$0x3] %vm60_vm0, %v52_v3  ;;  %v56_v16 = vadd.f32 %v94_v12, %v16_v10  ;;  %v18_v17 = vld [vmem:[%s201_s0 + $0xc] sm:$0x3]  ;;  %v57_v18 = vadd.f32 %v95_v15, %v17_v13  ;;  %v96_v19 = vld [vmem:[%s202_s1 + $0x6] ss:$0 sm:$0xff] }
   0x6   :  { %62 = vst.msk [vmem:[#allocation2 + $0x2] sm:$0x3] %vm60_vm0, %v53_v8  ;;  %v19_v20 = vld [vmem:[%s201_s0 + $0xe] sm:$0x3]  ;;  %v97_v21 = vld [vmem:[%s202_s1 + $0x7] ss:$0 sm:$0xff]  ;;  %v58_v22 = vadd.f32 %v96_v19, %v18_v17 }
   0x7   :  { %63 = vst.msk [vmem:[#allocation2 + $0x4] sm:$0x3] %vm60_vm0, %v54_v11 }
   0x8   :  { %64 = vst.msk [vmem:[#allocation2 + $0x6] sm:$0x3] %vm60_vm0, %v55_v14 }
   0x9   :  { %65 = vst.msk [vmem:[#allocation2 + $0x8] sm:$0x3] %vm60_vm0, %v56_v16 }
   0xa   :  { %66 = vst.msk [vmem:[#allocation2 + $0xa] sm:$0x3] %vm60_vm0, %v57_v18 }
   0xb   :  { %7 = vsyncpa [#allocation3], 0  ;;  %s124_s13 = smov [#allocation2]   ;;  %s75_s17 = sshll.u32 %s203_s2, 4  ;;  %v59_v23 = vadd.f32 %v97_v21, %v19_v20  ;;  %67 = vst.msk [vmem:[#allocation2 + $0xc] sm:$0x3] %vm60_vm0, %v58_v22  ;;  %s76_s17 = int_to_ptr.hbm [resolvable:$true] %s75_s17 }
   0xc   :  { %s73_s14 = sshll.u32 %s124_s13, 4  ;;  %s125_s0 = smov 32   ;;  %s74_s14 = int_to_ptr.vmem [resolvable:$true] %s73_s14 }
   0xd   :  { %68 = vst.msk [vmem:[#allocation2 + $0xe] sm:$0x3] %vm60_vm0, %v59_v23  ;;  %s126_s18 = smov 2  }
   0xe   :  { %81 = dma.vmem_to_hbm [thread:$0]  %s74_s14, 256, %s76_s17, [#allocation3], %s125_s0, %s125_s0, %s126_s18  }
   0xf   :  { %122 = dma.done.wait [#allocation3], 256  }
  0x10   :  { %123 = vsyncadd [#allocation3], 4294967040 }
  0x11   :  { %86 = vsyncpa [#allocation3], 1 }

</bundles_post_ra>
